<compile_context>
chip_gen: v5e
topology: v5e:2x2
jax: 0.10.0
libtpu: 0.0.40
codegen_flags: <defaults>
</compile_context>

<pallas_src>
import functools

import jax
import jax.numpy as jnp
from jax import lax
from jax.experimental import pallas as pl
from jax.experimental.pallas import tpu as pltpu


def fused_cnn_kernel(p_ref, wt_ref, bc_ref, w1_ref, b1_ref, w2_ref, b2_ref, out_ref, *, F):
    """conv(im2col) + bias + ReLU + 2x2 maxpool + fc1 + ReLU + fc2 for one image.

    p_ref  : (1, 4, K, P)  bf16  im2col patches, one (K, P) matrix per 2x2 pool tap
    wt_ref : (F, K)        bf16  conv weight, K = KH*KW*C ordered (kh, kw, c)
    bc_ref : (F, 1)        f32   conv bias (broadcast over the P lanes)
    w1_ref : (F, P, Hd)    bf16  fc1 weight permuted to (f, h2*W2+w2, hidden)
    b1_ref : (1, Hd)       f32
    w2_ref : (Hd, Ncls)    bf16
    b2_ref : (1, Ncls)     f32
    out_ref: (1, 1, Ncls)  f32
    """
    wt = wt_ref[...]
    # One full-depth MXU matmul per pool tap: (F, K) @ (K, P) -> (F, P), f32 accumulate.
    # (Mosaic pads K=196 internally to its 128-lane contraction chunks.)
    t0 = jnp.dot(wt, p_ref[0, 0], preferred_element_type=jnp.float32)
    t1 = jnp.dot(wt, p_ref[0, 1], preferred_element_type=jnp.float32)
    t2 = jnp.dot(wt, p_ref[0, 2], preferred_element_type=jnp.float32)
    t3 = jnp.dot(wt, p_ref[0, 3], preferred_element_type=jnp.float32)

    # 2x2/stride-2 max pool = elementwise max over the 4 taps (VPU, no MXU / no one-hots).
    pooled = jnp.maximum(jnp.maximum(t0, t1), jnp.maximum(t2, t3))
    pooled = jnp.maximum(pooled + bc_ref[...], 0.0)          # bias + ReLU, (F, P) f32

    # fc1: hidden[j] = sum_{f,p} pooled[f, p] * w1[f, p, j]; contract in F sublane chunks.
    h = b1_ref[...]                                          # (1, Hd) f32
    for f in range(F):                                       # static unroll, F is small
        h = h + jnp.dot(pooled[f:f + 1, :].astype(w1_ref.dtype), w1_ref[f],
                        preferred_element_type=jnp.float32)

    # TODO(synk): nn.Dropout has p=0.0 here (identity); stochastic dropout masking not implemented.
    h = jnp.maximum(h, 0.0)                                  # ReLU
    out_ref[0] = jnp.dot(h.astype(w2_ref.dtype), w2_ref[...],
                         preferred_element_type=jnp.float32) + b2_ref[...]


@functools.partial(jax.jit, static_argnames=("pad", "dropout_p"))
def classification_cnn_forward(x_nchw, params, *, pad, dropout_p=0.0):
    assert dropout_p == 0.0, "only dropout p=0 (identity) is implemented"
    N, C, H, W = x_nchw.shape
    conv_w = params["conv_w"]                                # (F, C, KH, KW) torch layout
    F_, _, KH, KW = conv_w.shape
    assert H % 2 == 0 and W % 2 == 0
    H2, W2 = H // 2, W // 2                                  # 'same' conv, pool 2 / stride 2
    P = H2 * W2
    K = KH * KW * C
    Hd = params["fc1_w"].shape[0]
    Ncls = params["fc2_w"].shape[0]

    # --- glue: im2col patches, tap-major and transposed (pure data movement, in XLA) ---
    x_nhwc = jnp.transpose(x_nchw, (0, 2, 3, 1))
    x_pad = jnp.pad(x_nhwc, ((0, 0), (pad, pad), (pad, pad), (0, 0)))
    cols = [x_pad[:, kh:kh + H, kw:kw + W, :] for kh in range(KH) for kw in range(KW)]
    patches = jnp.concatenate(cols, axis=-1)                 # (N, H, W, K), k=(kh*KW+kw)*C+c
    patches = patches.reshape(N, H2, 2, W2, 2, K)            # h = 2*h2 + a, w = 2*w2 + b
    patches = jnp.transpose(patches, (0, 2, 4, 5, 1, 3))     # (N, a, b, K, h2, w2)
    patches = patches.reshape(N, 4, K, P).astype(jnp.bfloat16)

    # --- glue: weight layout prep (bf16 MXU operands, f32 biases) ---
    wt = jnp.transpose(conv_w, (0, 2, 3, 1)).reshape(F_, K).astype(jnp.bfloat16)
    bc = params["conv_b"].reshape(F_, 1).astype(jnp.float32)
    # fc1_w columns are in PyTorch flatten order (f, h2, w2); permute to (f, p, hidden).
    w1 = params["fc1_w"].reshape(Hd, F_, P).transpose(1, 2, 0).astype(jnp.bfloat16)
    b1 = params["fc1_b"].reshape(1, Hd).astype(jnp.float32)
    w2 = params["fc2_w"].T.astype(jnp.bfloat16)
    b2 = params["fc2_b"].reshape(1, Ncls).astype(jnp.float32)

    kern = functools.partial(fused_cnn_kernel, F=F_)
    out = pl.pallas_call(
        kern,
        out_shape=jax.ShapeDtypeStruct((N, 1, Ncls), jnp.float32),
        grid=(N,),
        in_specs=[
            pl.BlockSpec((1, 4, K, P), lambda n: (n, 0, 0, 0)),
            pl.BlockSpec((F_, K), lambda n: (0, 0)),
            pl.BlockSpec((F_, 1), lambda n: (0, 0)),
            pl.BlockSpec((F_, P, Hd), lambda n: (0, 0, 0)),
            pl.BlockSpec((1, Hd), lambda n: (0, 0)),
            pl.BlockSpec((Hd, Ncls), lambda n: (0, 0)),
            pl.BlockSpec((1, Ncls), lambda n: (0, 0)),
        ],
        out_specs=pl.BlockSpec((1, 1, Ncls), lambda n: (n, 0, 0)),
        compiler_params=pltpu.CompilerParams(dimension_semantics=("parallel",)),
    )(patches, wt, bc, w1, b1, w2, b2)
    return out.reshape(N, Ncls)


def reference_forward(x_nchw, params, pad):
    """Pure-JAX f32 reference matching the PyTorch forward exactly."""
    y = lax.conv_general_dilated(x_nchw, params["conv_w"], (1, 1),
                                 [(pad, pad), (pad, pad)],
                                 dimension_numbers=("NCHW", "OIHW", "NCHW"))
    y = y + params["conv_b"][None, :, None, None]
    y = jnp.maximum(y, 0.0)
    y = lax.reduce_window(y, -jnp.inf, lax.max, (1, 1, 2, 2), (1, 1, 2, 2), "VALID")
    f = y.reshape(y.shape[0], -1)
    h = jnp.maximum(f @ params["fc1_w"].T + params["fc1_b"], 0.0)   # dropout p=0 => identity
    return h @ params["fc2_w"].T + params["fc2_b"]


if __name__ == "__main__":
    # Small shapes consistent with the module: input_dim=(4, 16, 16), num_filters=8,
    # kernel_size=7 (pad 3), pool=2/stride 2, hidden_dim=32, classes=10.
    N, C, H, W = 2, 4, 16, 16
    F_, KH, hidden, ncls = 8, 7, 32, 10
    pad = KH // 2
    weight_scale = 0.001
    D_fc = F_ * (H // 2) * (W // 2)

    key = jax.random.PRNGKey(0)
    ks = jax.random.split(key, 7)
    params = {
        "conv_w": weight_scale * jax.random.normal(ks[0], (F_, C, KH, KH), jnp.float32),
        "conv_b": 0.01 * jax.random.normal(ks[1], (F_,), jnp.float32),
        "fc1_w": 0.05 * jax.random.normal(ks[2], (hidden, D_fc), jnp.float32),
        "fc1_b": 0.01 * jax.random.normal(ks[3], (hidden,), jnp.float32),
        "fc2_w": 0.05 * jax.random.normal(ks[4], (ncls, hidden), jnp.float32),
        "fc2_b": 0.01 * jax.random.normal(ks[5], (ncls,), jnp.float32),
    }
    x = jax.random.normal(ks[6], (N, C, H, W), jnp.float32)

    out = classification_cnn_forward(x, params, pad=pad)
    out = jax.block_until_ready(out)
    assert out.shape == (N, ncls), out.shape

    ref = reference_forward(x, params, pad)
    # Tolerance loosened vs. the pure-f32 version because MXU operands are bf16.
    if not jnp.allclose(out, ref, rtol=2e-2, atol=2e-3):
        raise AssertionError(
            f"mismatch vs reference, max abs diff = {float(jnp.max(jnp.abs(out - ref)))}")
    print("KERNEL_OK")
</pallas_src>

<mosaic_0001>
module attributes {stable_mosaic.version = 11 : i64} {
  func.func @fused_cnn_kernel(%arg0: i32, %arg1: memref<1x4x196x64xbf16, #tpu.memory_space<vmem>>, %arg2: memref<8x196xbf16, #tpu.memory_space<vmem>>, %arg3: memref<8x1xf32, #tpu.memory_space<vmem>>, %arg4: memref<8x64x32xbf16, #tpu.memory_space<vmem>>, %arg5: memref<1x32xf32, #tpu.memory_space<vmem>>, %arg6: memref<32x10xbf16, #tpu.memory_space<vmem>>, %arg7: memref<1x10xf32, #tpu.memory_space<vmem>>, %arg8: memref<1x1x10xf32, #tpu.memory_space<vmem>>) attributes {dimension_semantics = [#tpu.dimension_semantics<parallel>], iteration_bounds = array<i64: 2>, scalar_prefetch = 0 : i64, scratch_operands = 0 : i64, tpu.core_type = #tpu.core_type<tc>, window_params = [{transform_indices = @transform_0, window_bounds = array<i64: 1, 4, 196, 64>}, {pipeline_mode = #tpu.pipeline_mode<synchronous>, transform_indices = @transform_1, window_bounds = array<i64: 8, 196>}, {pipeline_mode = #tpu.pipeline_mode<synchronous>, transform_indices = @transform_2, window_bounds = array<i64: 8, 1>}, {pipeline_mode = #tpu.pipeline_mode<synchronous>, transform_indices = @transform_3, window_bounds = array<i64: 8, 64, 32>}, {pipeline_mode = #tpu.pipeline_mode<synchronous>, transform_indices = @transform_4, window_bounds = array<i64: 1, 32>}, {pipeline_mode = #tpu.pipeline_mode<synchronous>, transform_indices = @transform_5, window_bounds = array<i64: 32, 10>}, {pipeline_mode = #tpu.pipeline_mode<synchronous>, transform_indices = @transform_6, window_bounds = array<i64: 1, 10>}, {transform_indices = @transform_7, window_bounds = array<i64: 1, 1, 10>}]} {
    %c0 = arith.constant 0 : index
    %c0_0 = arith.constant 0 : index
    %0 = vector.load %arg2[%c0, %c0_0] : memref<8x196xbf16, #tpu.memory_space<vmem>>, vector<8x196xbf16>
    %c0_1 = arith.constant 0 : index
    %c0_2 = arith.constant 0 : index
    %c0_3 = arith.constant 0 : index
    %c0_4 = arith.constant 0 : index
    %1 = vector.load %arg1[%c0_1, %c0_2, %c0_3, %c0_4] : memref<1x4x196x64xbf16, #tpu.memory_space<vmem>>, vector<1x1x196x64xbf16>
    %2 = vector.shape_cast %1 : vector<1x1x196x64xbf16> to vector<196x64xbf16>
    %cst = arith.constant dense<0.000000e+00> : vector<8x64xf32>
    %3 = tpu.matmul %0, %2, %cst {dimension_numbers = #tpu.dot_dimension_numbers<[1], [0], [0], [1], [0, 0, 1, 1], [], []>} : vector<8x196xbf16>, vector<196x64xbf16>, vector<8x64xf32> -> vector<8x64xf32>
    %c0_5 = arith.constant 0 : index
    %c1 = arith.constant 1 : index
    %c0_6 = arith.constant 0 : index
    %c0_7 = arith.constant 0 : index
    %4 = vector.load %arg1[%c0_5, %c1, %c0_6, %c0_7] : memref<1x4x196x64xbf16, #tpu.memory_space<vmem>>, vector<1x1x196x64xbf16>
    %5 = vector.shape_cast %4 : vector<1x1x196x64xbf16> to vector<196x64xbf16>
    %cst_8 = arith.constant dense<0.000000e+00> : vector<8x64xf32>
    %6 = tpu.matmul %0, %5, %cst_8 {dimension_numbers = #tpu.dot_dimension_numbers<[1], [0], [0], [1], [0, 0, 1, 1], [], []>} : vector<8x196xbf16>, vector<196x64xbf16>, vector<8x64xf32> -> vector<8x64xf32>
    %c0_9 = arith.constant 0 : index
    %c2 = arith.constant 2 : index
    %c0_10 = arith.constant 0 : index
    %c0_11 = arith.constant 0 : index
    %7 = vector.load %arg1[%c0_9, %c2, %c0_10, %c0_11] : memref<1x4x196x64xbf16, #tpu.memory_space<vmem>>, vector<1x1x196x64xbf16>
    %8 = vector.shape_cast %7 : vector<1x1x196x64xbf16> to vector<196x64xbf16>
    %cst_12 = arith.constant dense<0.000000e+00> : vector<8x64xf32>
    %9 = tpu.matmul %0, %8, %cst_12 {dimension_numbers = #tpu.dot_dimension_numbers<[1], [0], [0], [1], [0, 0, 1, 1], [], []>} : vector<8x196xbf16>, vector<196x64xbf16>, vector<8x64xf32> -> vector<8x64xf32>
    %c0_13 = arith.constant 0 : index
    %c3 = arith.constant 3 : index
    %c0_14 = arith.constant 0 : index
    %c0_15 = arith.constant 0 : index
    %10 = vector.load %arg1[%c0_13, %c3, %c0_14, %c0_15] : memref<1x4x196x64xbf16, #tpu.memory_space<vmem>>, vector<1x1x196x64xbf16>
    %11 = vector.shape_cast %10 : vector<1x1x196x64xbf16> to vector<196x64xbf16>
    %cst_16 = arith.constant dense<0.000000e+00> : vector<8x64xf32>
    %12 = tpu.matmul %0, %11, %cst_16 {dimension_numbers = #tpu.dot_dimension_numbers<[1], [0], [0], [1], [0, 0, 1, 1], [], []>} : vector<8x196xbf16>, vector<196x64xbf16>, vector<8x64xf32> -> vector<8x64xf32>
    %13 = arith.maximumf %3, %6 : vector<8x64xf32>
    %14 = arith.maximumf %9, %12 : vector<8x64xf32>
    %15 = arith.maximumf %13, %14 : vector<8x64xf32>
    %c0_17 = arith.constant 0 : index
    %c0_18 = arith.constant 0 : index
    %16 = vector.load %arg3[%c0_17, %c0_18] : memref<8x1xf32, #tpu.memory_space<vmem>>, vector<8x1xf32>
    %17 = vector.broadcast %16 : vector<8x1xf32> to vector<8x64xf32>
    %18 = arith.addf %15, %17 : vector<8x64xf32>
    %cst_19 = arith.constant 0.000000e+00 : f32
    %19 = vector.broadcast %cst_19 : f32 to vector<8x64xf32>
    %20 = arith.maximumf %18, %19 : vector<8x64xf32>
    %c0_20 = arith.constant 0 : index
    %c0_21 = arith.constant 0 : index
    %21 = vector.load %arg5[%c0_20, %c0_21] : memref<1x32xf32, #tpu.memory_space<vmem>>, vector<1x32xf32>
    %22 = vector.extract_strided_slice %20 {offsets = [0, 0], sizes = [1, 64], strides = [1, 1]} : vector<8x64xf32> to vector<1x64xf32>
    %23 = arith.truncf %22 : vector<1x64xf32> to vector<1x64xbf16>
    %c0_22 = arith.constant 0 : index
    %c0_23 = arith.constant 0 : index
    %c0_24 = arith.constant 0 : index
    %24 = vector.load %arg4[%c0_22, %c0_23, %c0_24] : memref<8x64x32xbf16, #tpu.memory_space<vmem>>, vector<1x64x32xbf16>
    %25 = vector.shape_cast %24 : vector<1x64x32xbf16> to vector<64x32xbf16>
    %cst_25 = arith.constant dense<0.000000e+00> : vector<1x32xf32>
    %26 = tpu.matmul %23, %25, %cst_25 {dimension_numbers = #tpu.dot_dimension_numbers<[1], [0], [0], [1], [0, 0, 1, 1], [], []>} : vector<1x64xbf16>, vector<64x32xbf16>, vector<1x32xf32> -> vector<1x32xf32>
    %27 = arith.addf %21, %26 : vector<1x32xf32>
    %28 = vector.extract_strided_slice %20 {offsets = [1, 0], sizes = [1, 64], strides = [1, 1]} : vector<8x64xf32> to vector<1x64xf32>
    %29 = arith.truncf %28 : vector<1x64xf32> to vector<1x64xbf16>
    %c1_26 = arith.constant 1 : index
    %c0_27 = arith.constant 0 : index
    %c0_28 = arith.constant 0 : index
    %30 = vector.load %arg4[%c1_26, %c0_27, %c0_28] : memref<8x64x32xbf16, #tpu.memory_space<vmem>>, vector<1x64x32xbf16>
    %31 = vector.shape_cast %30 : vector<1x64x32xbf16> to vector<64x32xbf16>
    %cst_29 = arith.constant dense<0.000000e+00> : vector<1x32xf32>
    %32 = tpu.matmul %29, %31, %cst_29 {dimension_numbers = #tpu.dot_dimension_numbers<[1], [0], [0], [1], [0, 0, 1, 1], [], []>} : vector<1x64xbf16>, vector<64x32xbf16>, vector<1x32xf32> -> vector<1x32xf32>
    %33 = arith.addf %27, %32 : vector<1x32xf32>
    %34 = vector.extract_strided_slice %20 {offsets = [2, 0], sizes = [1, 64], strides = [1, 1]} : vector<8x64xf32> to vector<1x64xf32>
    %35 = arith.truncf %34 : vector<1x64xf32> to vector<1x64xbf16>
    %c2_30 = arith.constant 2 : index
    %c0_31 = arith.constant 0 : index
    %c0_32 = arith.constant 0 : index
    %36 = vector.load %arg4[%c2_30, %c0_31, %c0_32] : memref<8x64x32xbf16, #tpu.memory_space<vmem>>, vector<1x64x32xbf16>
    %37 = vector.shape_cast %36 : vector<1x64x32xbf16> to vector<64x32xbf16>
    %cst_33 = arith.constant dense<0.000000e+00> : vector<1x32xf32>
    %38 = tpu.matmul %35, %37, %cst_33 {dimension_numbers = #tpu.dot_dimension_numbers<[1], [0], [0], [1], [0, 0, 1, 1], [], []>} : vector<1x64xbf16>, vector<64x32xbf16>, vector<1x32xf32> -> vector<1x32xf32>
    %39 = arith.addf %33, %38 : vector<1x32xf32>
    %40 = vector.extract_strided_slice %20 {offsets = [3, 0], sizes = [1, 64], strides = [1, 1]} : vector<8x64xf32> to vector<1x64xf32>
    %41 = arith.truncf %40 : vector<1x64xf32> to vector<1x64xbf16>
    %c3_34 = arith.constant 3 : index
    %c0_35 = arith.constant 0 : index
    %c0_36 = arith.constant 0 : index
    %42 = vector.load %arg4[%c3_34, %c0_35, %c0_36] : memref<8x64x32xbf16, #tpu.memory_space<vmem>>, vector<1x64x32xbf16>
    %43 = vector.shape_cast %42 : vector<1x64x32xbf16> to vector<64x32xbf16>
    %cst_37 = arith.constant dense<0.000000e+00> : vector<1x32xf32>
    %44 = tpu.matmul %41, %43, %cst_37 {dimension_numbers = #tpu.dot_dimension_numbers<[1], [0], [0], [1], [0, 0, 1, 1], [], []>} : vector<1x64xbf16>, vector<64x32xbf16>, vector<1x32xf32> -> vector<1x32xf32>
    %45 = arith.addf %39, %44 : vector<1x32xf32>
    %46 = vector.extract_strided_slice %20 {offsets = [4, 0], sizes = [1, 64], strides = [1, 1]} : vector<8x64xf32> to vector<1x64xf32>
    %47 = arith.truncf %46 : vector<1x64xf32> to vector<1x64xbf16>
    %c4 = arith.constant 4 : index
    %c0_38 = arith.constant 0 : index
    %c0_39 = arith.constant 0 : index
    %48 = vector.load %arg4[%c4, %c0_38, %c0_39] : memref<8x64x32xbf16, #tpu.memory_space<vmem>>, vector<1x64x32xbf16>
    %49 = vector.shape_cast %48 : vector<1x64x32xbf16> to vector<64x32xbf16>
    %cst_40 = arith.constant dense<0.000000e+00> : vector<1x32xf32>
    %50 = tpu.matmul %47, %49, %cst_40 {dimension_numbers = #tpu.dot_dimension_numbers<[1], [0], [0], [1], [0, 0, 1, 1], [], []>} : vector<1x64xbf16>, vector<64x32xbf16>, vector<1x32xf32> -> vector<1x32xf32>
    %51 = arith.addf %45, %50 : vector<1x32xf32>
    %52 = vector.extract_strided_slice %20 {offsets = [5, 0], sizes = [1, 64], strides = [1, 1]} : vector<8x64xf32> to vector<1x64xf32>
    %53 = arith.truncf %52 : vector<1x64xf32> to vector<1x64xbf16>
    %c5 = arith.constant 5 : index
    %c0_41 = arith.constant 0 : index
    %c0_42 = arith.constant 0 : index
    %54 = vector.load %arg4[%c5, %c0_41, %c0_42] : memref<8x64x32xbf16, #tpu.memory_space<vmem>>, vector<1x64x32xbf16>
    %55 = vector.shape_cast %54 : vector<1x64x32xbf16> to vector<64x32xbf16>
    %cst_43 = arith.constant dense<0.000000e+00> : vector<1x32xf32>
    %56 = tpu.matmul %53, %55, %cst_43 {dimension_numbers = #tpu.dot_dimension_numbers<[1], [0], [0], [1], [0, 0, 1, 1], [], []>} : vector<1x64xbf16>, vector<64x32xbf16>, vector<1x32xf32> -> vector<1x32xf32>
    %57 = arith.addf %51, %56 : vector<1x32xf32>
    %58 = vector.extract_strided_slice %20 {offsets = [6, 0], sizes = [1, 64], strides = [1, 1]} : vector<8x64xf32> to vector<1x64xf32>
    %59 = arith.truncf %58 : vector<1x64xf32> to vector<1x64xbf16>
    %c6 = arith.constant 6 : index
    %c0_44 = arith.constant 0 : index
    %c0_45 = arith.constant 0 : index
    %60 = vector.load %arg4[%c6, %c0_44, %c0_45] : memref<8x64x32xbf16, #tpu.memory_space<vmem>>, vector<1x64x32xbf16>
    %61 = vector.shape_cast %60 : vector<1x64x32xbf16> to vector<64x32xbf16>
    %cst_46 = arith.constant dense<0.000000e+00> : vector<1x32xf32>
    %62 = tpu.matmul %59, %61, %cst_46 {dimension_numbers = #tpu.dot_dimension_numbers<[1], [0], [0], [1], [0, 0, 1, 1], [], []>} : vector<1x64xbf16>, vector<64x32xbf16>, vector<1x32xf32> -> vector<1x32xf32>
    %63 = arith.addf %57, %62 : vector<1x32xf32>
    %64 = vector.extract_strided_slice %20 {offsets = [7, 0], sizes = [1, 64], strides = [1, 1]} : vector<8x64xf32> to vector<1x64xf32>
    %65 = arith.truncf %64 : vector<1x64xf32> to vector<1x64xbf16>
    %c7 = arith.constant 7 : index
    %c0_47 = arith.constant 0 : index
    %c0_48 = arith.constant 0 : index
    %66 = vector.load %arg4[%c7, %c0_47, %c0_48] : memref<8x64x32xbf16, #tpu.memory_space<vmem>>, vector<1x64x32xbf16>
    %67 = vector.shape_cast %66 : vector<1x64x32xbf16> to vector<64x32xbf16>
    %cst_49 = arith.constant dense<0.000000e+00> : vector<1x32xf32>
    %68 = tpu.matmul %65, %67, %cst_49 {dimension_numbers = #tpu.dot_dimension_numbers<[1], [0], [0], [1], [0, 0, 1, 1], [], []>} : vector<1x64xbf16>, vector<64x32xbf16>, vector<1x32xf32> -> vector<1x32xf32>
    %69 = arith.addf %63, %68 : vector<1x32xf32>
    %cst_50 = arith.constant 0.000000e+00 : f32
    %70 = vector.broadcast %cst_50 : f32 to vector<1x32xf32>
    %71 = arith.maximumf %69, %70 : vector<1x32xf32>
    %72 = arith.truncf %71 : vector<1x32xf32> to vector<1x32xbf16>
    %c0_51 = arith.constant 0 : index
    %c0_52 = arith.constant 0 : index
    %73 = vector.load %arg6[%c0_51, %c0_52] : memref<32x10xbf16, #tpu.memory_space<vmem>>, vector<32x10xbf16>
    %cst_53 = arith.constant dense<0.000000e+00> : vector<1x10xf32>
    %74 = tpu.matmul %72, %73, %cst_53 {dimension_numbers = #tpu.dot_dimension_numbers<[1], [0], [0], [1], [0, 0, 1, 1], [], []>} : vector<1x32xbf16>, vector<32x10xbf16>, vector<1x10xf32> -> vector<1x10xf32>
    %c0_54 = arith.constant 0 : index
    %c0_55 = arith.constant 0 : index
    %75 = vector.load %arg7[%c0_54, %c0_55] : memref<1x10xf32, #tpu.memory_space<vmem>>, vector<1x10xf32>
    %76 = arith.addf %74, %75 : vector<1x10xf32>
    %c0_56 = arith.constant 0 : index
    %c0_57 = arith.constant 0 : index
    %c0_58 = arith.constant 0 : index
    %77 = vector.load %arg8[%c0_56, %c0_57, %c0_58] : memref<1x1x10xf32, #tpu.memory_space<vmem>>, vector<1x1x10xf32>
    %78 = vector.shape_cast %77 : vector<1x1x10xf32> to vector<1x10xf32>
    %79 = vector.shape_cast %76 : vector<1x10xf32> to vector<1x1x10xf32>
    tpu.vector_store %arg8[%c0_56, %c0_57, %c0_58], %79 {strides = array<i32>} : memref<1x1x10xf32, #tpu.memory_space<vmem>>, vector<1x1x10xf32>,
    return
  }
  func.func @transform_0(%arg0: i32) -> (i32, i32, i32, i32) {
    %c0_i32 = arith.constant 0 : i32
    %c0_i32_0 = arith.constant 0 : i32
    %c0_i32_1 = arith.constant 0 : i32
    %c0_i32_2 = arith.constant 0 : i32
    return %arg0, %c0_i32, %c0_i32_0, %c0_i32_1 : i32, i32, i32, i32
  }
  func.func @transform_1(%arg0: i32) -> (i32, i32) {
    %c0_i32 = arith.constant 0 : i32
    %c0_i32_0 = arith.constant 0 : i32
    %c0_i32_1 = arith.constant 0 : i32
    return %c0_i32, %c0_i32_0 : i32, i32
  }
  func.func @transform_2(%arg0: i32) -> (i32, i32) {
    %c0_i32 = arith.constant 0 : i32
    %c0_i32_0 = arith.constant 0 : i32
    %c0_i32_1 = arith.constant 0 : i32
    return %c0_i32, %c0_i32_0 : i32, i32
  }
  func.func @transform_3(%arg0: i32) -> (i32, i32, i32) {
    %c0_i32 = arith.constant 0 : i32
    %c0_i32_0 = arith.constant 0 : i32
    %c0_i32_1 = arith.constant 0 : i32
    %c0_i32_2 = arith.constant 0 : i32
    return %c0_i32, %c0_i32_0, %c0_i32_1 : i32, i32, i32
  }
  func.func @transform_4(%arg0: i32) -> (i32, i32) {
    %c0_i32 = arith.constant 0 : i32
    %c0_i32_0 = arith.constant 0 : i32
    %c0_i32_1 = arith.constant 0 : i32
    return %c0_i32, %c0_i32_0 : i32, i32
  }
  func.func @transform_5(%arg0: i32) -> (i32, i32) {
    %c0_i32 = arith.constant 0 : i32
    %c0_i32_0 = arith.constant 0 : i32
    %c0_i32_1 = arith.constant 0 : i32
    return %c0_i32, %c0_i32_0 : i32, i32
  }
  func.func @transform_6(%arg0: i32) -> (i32, i32) {
    %c0_i32 = arith.constant 0 : i32
    %c0_i32_0 = arith.constant 0 : i32
    %c0_i32_1 = arith.constant 0 : i32
    return %c0_i32, %c0_i32_0 : i32, i32
  }
  func.func @transform_7(%arg0: i32) -> (i32, i32, i32) {
    %c0_i32 = arith.constant 0 : i32
    %c0_i32_0 = arith.constant 0 : i32
    %c0_i32_1 = arith.constant 0 : i32
    return %arg0, %c0_i32, %c0_i32_0 : i32, i32, i32
  }
}

</mosaic_0001>

<bundles_post_ra>
// kernel: classification_cnn_forward.1
= control target key start
LH: loop header
LB: loop body
LE: loop exit
PB: predicated region body
PF: predicated region fallthrough
CT: control target
= control target key end

     0   :  { %12 = vsyncpa [#allocation3], 0  ;;  %s2322_s0 = inlined_call_operand.vmem [shape: bf16[2,4,196,64], index: 0, kind: input, shape index: {}]   ;;  %s2323_s1 = inlined_call_operand.vmem [shape: bf16[8,196], index: 1, kind: input, shape index: {}]   ;;  %s2324_s2 = inlined_call_operand.vmem [shape: f32[8,1], index: 2, kind: input, shape index: {}]   ;;  %s2325_s3 = inlined_call_operand.vmem [shape: bf16[8,64,32], index: 3, kind: input, shape index: {}]   ;;  %s2326_s4 = inlined_call_operand.vmem [shape: f32[1,32], index: 4, kind: input, shape index: {}]   ;;  %s2327_s5 = inlined_call_operand.vmem [shape: bf16[32,10], index: 5, kind: input, shape index: {}]   ;;  %s2328_s6 = inlined_call_operand.vmem [shape: f32[1,10], index: 6, kind: input, shape index: {}]   ;;  %s2329_s7 = inlined_call_operand.hbm [shape: f32[2,1,10], index: 7, kind: output, shape index: {}]  }
   0x1   :  { %14 = vsyncpa [#allocation3 + $0x1], 0  ;;  %s2044_s24 = smov 0   ;;  %s2046_s25 = smov 0  }
   0x2   :  { %s2048_s26 = smov 0   ;;  %s2050_s27 = smov 0  }
   0x3 LB: > { %s2065_s28 = sadd.s32 4294967295, %s2001_s27   ;;  %s1336_s29 = sadd.s32 4294967294, %s2001_s27   ;;  %s2001_s27 = sphi %s2050_s27, %s2335_s27   ;;  %s1997_s26 = sphi %s2048_s26, %s2334_s26   ;;  %s1993_s25 = sphi %s2046_s25, %s2333_s25   ;;  %s1989_s24 = sphi %s2044_s24, %s2332_s24  }
   0x4   : > { %s2069_s30 = sadd.s32 1, %s2001_s27   ;;  %s179_s8 = sadd.s32 1, %s1997_s26 }
   0x5   : > { %s176_s9 = ssub.s32 %s2001_s27, %s2069_s30  ;;  %p189_p0 = scmp.ne.s32.totalorder %s1997_s26, %s1993_s25 }
   0x6   : > { %p177_p1 = scmp.eq.s32.totalorder %s176_s9, 0  ;;  %p190_p2 = scmp.eq.s32.totalorder %s2065_s28, 1 }
   0x7   : > { %p195_p3 = scmp.ne.s32.totalorder %s1993_s25, %s1989_s24  ;;  %p196_p4 = scmp.eq.s32.totalorder %s1336_s29, 1 }
   0x8   : > { %s2080_s10 = scalar_select %p177_p1, %s1997_s26, %s179_s8  }
   0x9   : > { %p2082_p5 = por %p190_p2, %p189_p0  ;;  %p2086_p6 = por %p196_p4, %p195_p3 }
   0xa   : > { %p1339_p7 = scmp.ge.s32.totalorder %s2001_s27, 1  ;;  %p240_p8 = scmp.lt.s32.totalorder %s2001_s27, 3 }
   0xc   : > { %p241_p9 = pnand %p1339_p7, %p240_p8 }
   0xd   : > { %p271_p10 = scmp.lt.s32.totalorder (!%p241_p9), %s2065_s28, 1  ;;  %s269_s22 = sand.u32 (!%p241_p9), 1, %s1993_s25  }
   0xe   : > { %244 = sbr.rel (%p241_p9) target bundleno = 530 (0x212), region = 48  ;;  %s1277_s8 = scalar_lea.hbm (!%p241_p9), %s2329_s7, %s2065_s28 }
   0xf   : > { %s1281_s16 = sshll.u32 (!%p241_p9), %s1277_s8, 4  ;;  %s1959_s21 = scalar_lea.hbm (!%p241_p9), %s2329_s7, 2  ;;  %s1282_s16 = int_to_ptr.hbm [resolvable:$true] %s1281_s16 }
  0x10   : > { %s1953_s18 = sshra.s32 (!%p241_p9), %s1282_s16, 4  ;;  %s1954_s18 = int_to_ptr.hbm [resolvable:$true] %s1953_s18 }
  0x11   : > { %s1955_s19 = scalar_lea.hbm (!%p241_p9), %s1954_s18, 1  ;;  %p1960_p0 = scmp.lt.s32.totalorder (!%p241_p9), %s1954_s18, %s2329_s7 }
  0x12   : > { %p1956_p11 = scmp.ne.s32.totalorder (!%p241_p9), %s1954_s18, %s1955_s19  ;;  %p1961_p1 = scmp.lt.s32.totalorder (!%p241_p9), %s1959_s21, %s1955_s19 }
  0x13   : > { %s272_s13 = scalar_select %p271_p10, %s2065_s28, 1  ;;  %vm388_vm0 = vcmask 1041408   ;;  %v277_v26 = vld [vmem:[%s2323_s1] sm:$0xff]  ;;  %vm384_vm1 = vcmask 556032   ;;  %v2003_v55 = vmov 0   ;;  %vm853_vm2 = vcmask 523264  }
  0x14   : > { %v305_v32 = vunpack.c.h.b16 %v277_v26  ;;  %v304_v42 = vunpack.c.l.b16 %v277_v26  ;;  %v811_v53 = vld [vmem:[%s2324_s2] sm:$0xff]  ;;  %1938 = vset.pattern.permute.xlu0 %v2003_v55  ;;  %vm1249_vm3 = vcmask 261120   ;;  %vm1266_vm4 = vcmask 73728   ;;  %p1957_p12 = pnand %p1956_p11, %p2082_p5  ;;  %p1962_p2 = por %p1961_p1, %p1960_p0 }
  0x15   : > { %s1897_s14 = smul.u32 400, %s272_s13  ;;  %814 = vperm.xlu0 %1938, %v811_v53   ;;  %v1867_v26 = vld [vmem:[%s2325_s3 + $0x20] sm:$0xff] }
  0x16   : > { %v2132_v39 = vpack.c.b16 %v305_v32, %v305_v32  ;;  %v306_v49 = vpack.c.b16 %v304_v42, %v304_v42  ;;  %v1890_v32 = vld [vmem:[%s2325_s3 + $0xd8] sm:$0xff]  ;;  %p1958_p13 = pneg %p1957_p12 }
  0x17   : > { %s2097_s17 = scalar_lea.vmem %s2322_s0, %s1897_s14  ;;  %s270_s14 = scalar_lea.vmem [#allocation2], %s269_s22 }
  0x18   : > { %v1822_v0 = vld [vmem:[%s2097_s17 + $0x38] sm:$0xff]  ;;  %v302_v2 = vld [vmem:[%s2097_s17 + $0x60] sm:$0x3]  ;;  %v1821_v3 = vld [vmem:[%s2097_s17 + $0x30] sm:$0xff]  ;;  %s1279_s15 = sshll.u32 %s270_s14, 4  ;;  %p1963_p3 = pnand %p1962_p2, %p1958_p13  ;;  %s1280_s15 = int_to_ptr.vmem [resolvable:$true] %s1279_s15 }
  0x19   : > { %v1834_v1 = vld [vmem:[%s2097_s17 + $0x9c] sm:$0xff]  ;;  %392 = vmatpush.bf16.msra.mxu0 %v1822_v0  ;;  %v358_v4 = vunpack.c.l.b16 %v302_v2  ;;  %v1833_v5 = vld [vmem:[%s2097_s17 + $0x94] sm:$0xff]  ;;  %v1414_v6 = vld [vmem:[%s2097_s17 + $0xc4] sm:$0x3] }
  0x1a   : > { %522 = vmatpush.bf16.msra.mxu2 %v1834_v1  ;;  %v493_v7 = vunpack.c.l.b16 %v1414_v6  ;;  %v1820_v11 = vld [vmem:[%s2097_s17 + $0x28] sm:$0xff]  ;;  %v1826_v13 = vld [vmem:[%s2097_s17 + $0x58] sm:$0xff]  ;;  %v1819_v16 = vld [vmem:[%s2097_s17 + $0x20] sm:$0xff] }
  0x1b   : > { %v371_v8 = vpack.c.b16 %v358_v4, %v358_v4  ;;  %v1832_v12 = vld [vmem:[%s2097_s17 + $0x8c] sm:$0xff]  ;;  %v1838_v15 = vld [vmem:[%s2097_s17 + $0xbc] sm:$0xff]  ;;  %v1831_v17 = vld [vmem:[%s2097_s17 + $0x84] sm:$0xff] }
  0x1c   : > { %v506_v9 = vpack.c.b16 %v493_v7, %v493_v7  ;;  %v1825_v18 = vld [vmem:[%s2097_s17 + $0x50] sm:$0xff]  ;;  %v1488_v19 = vld [vmem:[%s2097_s17 + $0x128] sm:$0x3]  ;;  %v1818_v21 = vld [vmem:[%s2097_s17 + $0x18] sm:$0xff] }
  0x1d   : > { %393 = vmatpush.bf16.msra.mxu0 %v1821_v3  ;;  %v390_v10 = vsel %vm388_vm0, %v371_v8, 0  ;;  %v1837_v20 = vld [vmem:[%s2097_s17 + $0xb4] sm:$0xff]  ;;  %v1830_v22 = vld [vmem:[%s2097_s17 + $0x7c] sm:$0xff]  ;;  %v623_v23 = vunpack.c.l.b16 %v1488_v19  ;;  %v1824_v24 = vld [vmem:[%s2097_s17 + $0x48] sm:$0xff] }
  0x1e   : > { %523 = vmatpush.bf16.msra.mxu2 %v1833_v5  ;;  %408 = vmatpush.bf16.msra.mxu1 %v390_v10  ;;  %v520_v14 = vsel %vm388_vm0, %v506_v9, 0  ;;  %v1836_v25 = vld [vmem:[%s2097_s17 + $0xac] sm:$0xff]  ;;  %v1829_v29 = vld [vmem:[%s2097_s17 + $0x74] sm:$0xff]  ;;  %v1823_v31 = vld [vmem:[%s2097_s17 + $0x40] sm:$0xff] }
  0x1f   : > { %538 = vmatpush.bf16.msra.mxu3 %v520_v14  ;;  %v1562_v27 = vld [vmem:[%s2097_s17 + $0x18c] sm:$0x3]  ;;  %v1817_v28 = vld [vmem:[%s2097_s17 + $0x10] sm:$0xff]  ;;  %v636_v30 = vpack.c.b16 %v623_v23, %v623_v23  ;;  %v1846_v33 = vld [vmem:[%s2097_s17 + $0x100] sm:$0xff] }
  0x20   : > { %v1835_v34 = vld [vmem:[%s2097_s17 + $0xa4] sm:$0xff]  ;;  %v753_v35 = vunpack.c.l.b16 %v1562_v27  ;;  %v1828_v37 = vld [vmem:[%s2097_s17 + $0x6c] sm:$0xff]  ;;  %v1845_v40 = vld [vmem:[%s2097_s17 + $0xf8] sm:$0xff] }
  0x21   : > { %394 = vmatpush.bf16.msra.mxu0 %v1820_v11  ;;  %v1816_v36 = vld [vmem:[%s2097_s17 + $0x8] sm:$0xff]  ;;  %v650_v38 = vsel %vm388_vm0, %v636_v30, 0  ;;  %v1850_v43 = vld [vmem:[%s2097_s17 + $0x120] sm:$0xff]  ;;  %v1844_v47 = vld [vmem:[%s2097_s17 + $0xf0] sm:$0xff] }
  0x22   : > { %524 = vmatpush.bf16.msra.mxu2 %v1832_v12  ;;  %409 = vmatpush.bf16.msra.mxu1 %v1826_v13  ;;  %v766_v41 = vpack.c.b16 %v753_v35, %v753_v35  ;;  %v1815_v44 = vld [vmem:[%s2097_s17] sm:$0xff]  ;;  %v1849_v50 = vld [vmem:[%s2097_s17 + $0x118] sm:$0xff]  ;;  %v1843_v54 = vld [vmem:[%s2097_s17 + $0xe8] sm:$0xff] }
  0x23   : > { %539 = vmatpush.bf16.msra.mxu3 %v1838_v15  ;;  %v1827_v45 = vld [vmem:[%s2097_s17 + $0x64] sm:$0xff]  ;;  %v1857_v51 = vld [vmem:[%s2097_s17 + $0x15c] sm:$0xff]  ;;  %v1848_v56 = vld [vmem:[%s2097_s17 + $0x110] sm:$0xff] }
  0x24   : > { %v1858_v46 = vld [vmem:[%s2097_s17 + $0x164] sm:$0xff]  ;;  %v780_v48 = vsel %vm388_vm0, %v766_v41, 0  ;;  %v1856_v57 = vld [vmem:[%s2097_s17 + $0x154] sm:$0xff]  ;;  %v1861_v58 = vld [vmem:[%s2097_s17 + $0x17c] sm:$0xff] }
  0x25   : > { %395 = vmatpush.bf16.msra.mxu0 %v1819_v16  ;;  %v1862_v52 = vld [vmem:[%s2097_s17 + $0x184] sm:$0xff]  ;;  %v1855_v61 = vld [vmem:[%s2097_s17 + $0x14c] sm:$0xff]  ;;  %v1860_v62 = vld [vmem:[%s2097_s17 + $0x174] sm:$0xff] }
  0x26   : > { %525 = vmatpush.bf16.msra.mxu2 %v1831_v17  ;;  %410 = vmatpush.bf16.msra.mxu1 %v1825_v18  ;;  %v1842_v59 = vld [vmem:[%s2097_s17 + $0xe0] sm:$0xff]  ;;  %v1847_v60 = vld [vmem:[%s2097_s17 + $0x108] sm:$0xff]  ;;  %v1841_v63 = vld [vmem:[%s2097_s17 + $0xd8] sm:$0xff] }
  0x27   : > { %540 = vmatpush.bf16.msra.mxu3 %v1837_v20  ;;  %v1854_v0 = vld [vmem:[%s2097_s17 + $0x144] sm:$0xff]  ;;  %v1859_v1 = vld [vmem:[%s2097_s17 + $0x16c] sm:$0xff]  ;;  %v1853_v3 = vld [vmem:[%s2097_s17 + $0x13c] sm:$0xff] }
  0x28   : > { %v1840_v2 = vld [vmem:[%s2097_s17 + $0xd0] sm:$0xff]  ;;  %v1839_v4 = vld [vmem:[%s2097_s17 + $0xc8] sm:$0xff]  ;;  %v1866_v7 = vld [vmem:[%s2325_s3 + $0x18] sm:$0xff] }
  0x29   : > { %396 = vmatpush.bf16.msra.mxu0 %v1818_v21  ;;  %v1852_v5 = vld [vmem:[%s2097_s17 + $0x134] sm:$0xff]  ;;  %v1851_v6 = vld [vmem:[%s2097_s17 + $0x12c] sm:$0xff]  ;;  %v1871_v27 = vld [vmem:[%s2325_s3 + $0x40] sm:$0xff]  ;;  %s1269_s17 = scalar_lea.sflag [#allocation3], %s269_s22 }
  0x2a   : > { %526 = vmatpush.bf16.msra.mxu2 %v1830_v22  ;;  %411 = vmatpush.bf16.msra.mxu1 %v1824_v24  ;;  %v1870_v9 = vld [vmem:[%s2325_s3 + $0x38] sm:$0xff]  ;;  %v1865_v12 = vld [vmem:[%s2325_s3 + $0x10] sm:$0xff]  ;;  %v1864_v18 = vld [vmem:[%s2325_s3 + $0x8] sm:$0xff] }
  0x2b   : > { %541 = vmatpush.bf16.msra.mxu3 %v1836_v25  ;;  %v1874_v10 = vld [vmem:[%s2325_s3 + $0x58] sm:$0xff]  ;;  %v1869_v14 = vld [vmem:[%s2325_s3 + $0x30] sm:$0xff]  ;;  %v1868_v20 = vld [vmem:[%s2325_s3 + $0x28] sm:$0xff] }
  0x2c   : > { %v1882_v11 = vld [vmem:[%s2325_s3 + $0x98] sm:$0xff]  ;;  %v1873_v15 = vld [vmem:[%s2325_s3 + $0x50] sm:$0xff]  ;;  %v1872_v21 = vld [vmem:[%s2325_s3 + $0x48] sm:$0xff] }
  0x2d   : > { %397 = vmatpush.bf16.msra.mxu0 %v1817_v28  ;;  %v1881_v16 = vld [vmem:[%s2325_s3 + $0x90] sm:$0xff]  ;;  %v1880_v22 = vld [vmem:[%s2325_s3 + $0x88] sm:$0xff]  ;;  %v1863_v24 = vld [vmem:[%s2325_s3] sm:$0xff] }
  0x2e   : > { %527 = vmatpush.bf16.msra.mxu2 %v1829_v29  ;;  %412 = vmatpush.bf16.msra.mxu1 %v1823_v31  ;;  %v1879_v28 = vld [vmem:[%s2325_s3 + $0x80] sm:$0xff]  ;;  %v1878_v30 = vld [vmem:[%s2325_s3 + $0x78] sm:$0xff]  ;;  %v1885_v35 = vld [vmem:[%s2325_s3 + $0xb0] sm:$0xff] }
  0x2f   : > { %542 = vmatpush.bf16.msra.mxu3 %v1835_v34  ;;  %v1886_v31 = vld [vmem:[%s2325_s3 + $0xb8] sm:$0xff]  ;;  %v1875_v41 = vld [vmem:[%s2325_s3 + $0x60] sm:$0xff] }
  0x31   : > { %398 = vmatpush.bf16.msra.mxu0 %v1816_v36  ;;  %1389 = vmatmul.msk.bf16.vlgmr.msra.gmra.mxu1 %vm384_vm1, %v2132_v39  ;;  %v1889_v36 = vld [vmem:[%s2325_s3 + $0xd0] sm:$0xff] }
  0x32   : > { %652 = vmatpush.bf16.msrb.mxu1 %v1846_v33  ;;  %528 = vmatpush.bf16.msra.mxu2 %v1828_v37  ;;  %v1877_v33 = vld [vmem:[%s2325_s3 + $0x70] sm:$0xff]  ;;  %v1876_v37 = vld [vmem:[%s2325_s3 + $0x68] sm:$0xff] }
  0x33   : > { %668 = vmatpush.bf16.msrb.mxu3 %v650_v38 }
  0x34   : > { %1463 = vmatmul.msk.bf16.vlgmr.msra.gmra.mxu3 %vm384_vm1, %v2132_v39 }
  0x35   : > { %399 = vmatpush.bf16.msra.mxu0 %v1815_v44  ;;  %v1887_v44 = vld [vmem:[%s2325_s3 + $0xc0] sm:$0xff] }
  0x36   : > { %653 = vmatpush.bf16.msrb.mxu1 %v1845_v40  ;;  %529 = vmatpush.bf16.msra.mxu2 %v1827_v45  ;;  %v1888_v40 = vld [vmem:[%s2325_s3 + $0xc8] sm:$0xff] }
  0x37   : > { %669 = vmatpush.bf16.msrb.mxu3 %v1850_v43  ;;  %v1883_v43 = vld [vmem:[%s2325_s3 + $0xa0] sm:$0xff] }
  0x38   : > { %400 = vmatmul.bf16.vlgmr.msra.gmra.mxu0 %v306_v49 }
  0x39   : > { %782 = vmatpush.bf16.msrb.mxu0 %v1858_v46  ;;  %530 = vmatmul.bf16.vlgmr.msra.gmra.mxu2 %v306_v49 }
  0x3a   : > { %798 = vmatpush.bf16.msrb.mxu2 %v780_v48  ;;  %654 = vmatpush.bf16.msrb.mxu1 %v1844_v47 }
  0x3b   : > { %670 = vmatpush.bf16.msrb.mxu3 %v1849_v50 }
  0x3d   : > { %783 = vmatpush.bf16.msrb.mxu0 %v1857_v51 }
  0x3e   : > { %799 = vmatpush.bf16.msrb.mxu2 %v1862_v52  ;;  %655 = vmatpush.bf16.msrb.mxu1 %v1843_v54 }
  0x3f   : > { %671 = vmatpush.bf16.msrb.mxu3 %v1848_v56 }
  0x41   : > { %784 = vmatpush.bf16.msrb.mxu0 %v1856_v57 }
  0x42   : > { %800 = vmatpush.bf16.msrb.mxu2 %v1861_v58  ;;  %656 = vmatpush.bf16.msrb.mxu1 %v1842_v59 }
  0x43   : > { %672 = vmatpush.bf16.msrb.mxu3 %v1847_v60 }
  0x45   : > { %785 = vmatpush.bf16.msrb.mxu0 %v1855_v61  ;;  %v1894_v61 = vld [vmem:[%s2325_s3 + $0xf8] sm:$0xff] }
  0x46   : > { %801 = vmatpush.bf16.msrb.mxu2 %v1860_v62  ;;  %657 = vmatpush.bf16.msrb.mxu1 %v1841_v63 }
  0x47   : > { %1537 = vmatmul.msk.bf16.vlgmr.msrb.gmra.mxu3 %vm384_vm1, %v2132_v39 }
  0x48   : > { %861 = vmatpush.bf16.msra.mxu3 %v1866_v7 }
  0x49   : > { %786 = vmatpush.bf16.msrb.mxu0 %v1854_v0 }
  0x4a   : > { %802 = vmatpush.bf16.msrb.mxu2 %v1859_v1  ;;  %658 = vmatpush.bf16.msrb.mxu1 %v1840_v2  ;;  %v1893_v2 = vld [vmem:[%s2325_s3 + $0xf0] sm:$0xff] }
  0x4c   : > { %862 = vmatpush.bf16.msra.mxu3 %v1865_v12 }
  0x4d   : > { %1611 = vmatmul.msk.bf16.vlgmr.msrb.gmra.mxu2 %vm384_vm1, %v2132_v39  ;;  %787 = vmatpush.bf16.msrb.mxu0 %v1853_v3  ;;  %v1884_v39 = vld [vmem:[%s2325_s3 + $0xa8] sm:$0xff] }
  0x4e   : > { %659 = vmatpush.bf16.msrb.mxu1 %v1839_v4  ;;  %965 = vmatpush.bf16.msra.mxu2 %v1874_v10  ;;  %v1892_v3 = vld [vmem:[%s2325_s3 + $0xe8] sm:$0xff]  ;;  %v1891_v4 = vld [vmem:[%s2325_s3 + $0xe0] sm:$0xff] }
  0x4f   : > { %v1895_v10 = vld [vmem:[%s2327_s5] sm:$0xff] }
  0x50   : > { %863 = vmatpush.bf16.msra.mxu3 %v1864_v18 }
  0x51   : > { %660 = vmatmul.bf16.vlgmr.msrb.gmra.mxu1 %v306_v49  ;;  %788 = vmatpush.bf16.msrb.mxu0 %v1852_v5 }
  0x52   : > { %913 = vmatpush.bf16.msra.mxu1 %v1870_v9  ;;  %966 = vmatpush.bf16.msra.mxu2 %v1873_v15  ;;  %v1896_v9 = vld [vmem:[%s2327_s5 + $0x8] sm:$0xff] }
  0x54   : > { %864 = vmatpush.bf16.msra.mxu3 %v1863_v24 }
  0x55   : > { %789 = vmatpush.bf16.msrb.mxu0 %v1851_v6 }
  0x56   : > { %914 = vmatpush.bf16.msra.mxu1 %v1869_v14  ;;  %967 = vmatpush.bf16.msra.mxu2 %v1872_v21 }
  0x58   : > { %790 = vmatmul.bf16.vlgmr.msrb.gmra.mxu0 %v306_v49  ;;  %1016 = vmatpush.bf16.msrb.mxu3 %v1878_v30 }
  0x59   : > { %1067 = vmatpush.bf16.msra.mxu0 %v1882_v11 }
  0x5a   : > { %915 = vmatpush.bf16.msra.mxu1 %v1868_v20  ;;  %968 = vmatpush.bf16.msra.mxu2 %v1871_v27 }
  0x5c   : > { %1017 = vmatpush.bf16.msrb.mxu3 %v1877_v33 }
  0x5d   : > { %1068 = vmatpush.bf16.msra.mxu0 %v1881_v16 }
  0x5e   : > { %916 = vmatpush.bf16.msra.mxu1 %v1867_v26  ;;  %1169 = vmatpush.bf16.msrb.mxu2 %v1890_v32 }
  0x60   : > { %1018 = vmatpush.bf16.msrb.mxu3 %v1876_v37 }
  0x61   : > { %1069 = vmatpush.bf16.msra.mxu0 %v1880_v22 }
  0x62   : > { %1118 = vmatpush.bf16.msrb.mxu1 %v1886_v31  ;;  %1170 = vmatpush.bf16.msrb.mxu2 %v1889_v36 }
  0x64   : > { %1019 = vmatpush.bf16.msrb.mxu3 %v1875_v41 }
  0x65   : > { %1070 = vmatpush.bf16.msra.mxu0 %v1879_v28 }
  0x66   : > { %1119 = vmatpush.bf16.msrb.mxu1 %v1885_v35  ;;  %1171 = vmatpush.bf16.msrb.mxu2 %v1888_v40 }
  0x69   : > { %1259 = vmatpush.bf16.msrb.mxu0 %v1896_v9 }
  0x6a   : > { %1120 = vmatpush.bf16.msrb.mxu1 %v1884_v39  ;;  %1172 = vmatpush.bf16.msrb.mxu2 %v1887_v44 }
  0x6d   : > { %1260 = vmatpush.bf16.msrb.mxu0 %v1895_v10 }
  0x6e   : > { %1121 = vmatpush.bf16.msrb.mxu1 %v1883_v43 }
  0x87   : > { %v815_v56 = vpop.permute.xlu0 %814 }
  0xae   : > { %v2174_v8 = vpop.f32.mrf.mxu1 }
  0xb5   : > { %v401_v17 = vpop.f32.mrf.mxu0 }
  0xb6   : > { %v416_v19 = vpop.f32.mrf.mxu1  ;;  %v415_v47 = vadd.f32 %v2174_v8, %v401_v17  ;;  %v819_v17 = vld [vmem:[%s2326_s4] sm:$0x1] }
  0xb7   : > { %v544_v13 = vpop.f32.mrf.mxu3 }
  0xbc   : > { %v531_v23 = vpop.f32.mrf.mxu2 }
  0xbd   : > { %v403_v29 = vpop.f32.mrf.mxu0  ;;  %v545_v48 = vadd.f32 %v544_v13, %v531_v23 }
  0xbf   : > { %v546_v25 = vpop.f32.mrf.mxu3  ;;  %v808_v54 = vmax.f32 %v415_v47, %v545_v48 }
  0xc4   : > { %v533_v34 = vpop.f32.mrf.mxu2 }
  0xca   : > { %v674_v38 = vpop.f32.mrf.mxu3 }
  0xce   : > { %v661_v42 = vpop.f32.mrf.mxu1 }
  0xcf   : > { %v675_v49 = vadd.f32 %v674_v38, %v661_v42  ;;  %v1236_v38 = vld [vmem:[%s2328_s6] sm:$0x1] }
  0xd0   : > { %v804_v45 = vpop.f32.mrf.mxu2 }
  0xd2   : > { %v676_v46 = vpop.f32.mrf.mxu3 }
  0xd5   : > { %v791_v50 = vpop.f32.mrf.mxu0 }
  0xd6   : > { %v663_v51 = vpop.f32.mrf.mxu1  ;;  %v805_v52 = vadd.f32 %v804_v45, %v791_v50 }
  0xd8   : > { %v806_v53 = vpop.f32.mrf.mxu2  ;;  %v809_v55 = vmax.f32 %v675_v49, %v805_v52 }
  0xda   : > { %v810_v57 = vmax.f32 %v808_v54, %v809_v55 }
  0xdc   : > { %v817_v58 = vadd.f32 %v815_v56, %v810_v57 }
  0xdd   : > { %v793_v59 = vpop.f32.mrf.mxu0 }
  0xde   : > { %v818_v60 = vmax.f32 %v817_v58, 0.0 }
  0xe0   : > { %v820_v62 = vpack.c.bf16 %v818_v60, %v818_v60 }
  0xe2   : > { %1628 = vmatmul.msk.bf16.vlgmr.msra.gmra.mxu3 %vm853_vm2, %v820_v62  ;;  %v880_v63 = vshrl.u32 %v820_v62, 16  ;;  %v933_v0 = vrot.slane %v820_v62, 1  ;;  %v1035_v1 = vrot.slane %v820_v62, 2  ;;  %v1137_v7 = vrot.slane %v820_v62, 3 }
  0xe3   : > { %1220 = vmatpush.bf16.msra.mxu3 %v1894_v61 }
  0xe4   : > { %1653 = vmatmul.msk.bf16.vlgmr.msra.gmra.mxu1 %vm853_vm2, %v880_v63  ;;  %1678 = vmatmul.msk.bf16.vlgmr.msra.gmra.mxu2 %vm853_vm2, %v933_v0  ;;  %v984_v5 = vrot.slane %v880_v63, 1  ;;  %v1086_v6 = vrot.slane %v880_v63, 2  ;;  %v1188_v8 = vrot.slane %v880_v63, 3 }
  0xe5   : > { %1728 = vmatmul.msk.bf16.vlgmr.msra.gmra.mxu0 %vm853_vm2, %v1035_v1 }
  0xe7   : > { %1221 = vmatpush.bf16.msra.mxu3 %v1893_v2 }
  0xeb   : > { %1222 = vmatpush.bf16.msra.mxu3 %v1892_v3 }
  0xef   : > { %1223 = vmatpush.bf16.msra.mxu3 %v1891_v4 }
  0xf2   : > { %1703 = vmatmul.msk.bf16.vlgmr.msrb.gmra.mxu3 %vm853_vm2, %v984_v5 }
  0xf4   : > { %1753 = vmatmul.msk.bf16.vlgmr.msrb.gmra.mxu1 %vm853_vm2, %v1086_v6  ;;  %1778 = vmatmul.msk.bf16.vlgmr.msrb.gmra.mxu2 %vm853_vm2, %v1137_v7 }
 0x102   : > { %1803 = vmatmul.msk.bf16.vlgmr.msra.gmra.mxu3 %vm853_vm2, %v1188_v8 }
 0x161   : > { %v918_v11 = vpop.f32.mrf.mxu1 }
 0x162   : > { %v1072_v12 = vpop.f32.mrf.mxu0 }
 0x165   : > { %v866_v13 = vpop.f32.mrf.mxu3 }
 0x166   : > { %v870_v19 = vadd.f32 %v866_v13, %v819_v17 }
 0x167   : > { %v970_v14 = vpop.f32.mrf.mxu2 }
 0x168   : > { %v922_v22 = vadd.f32 %v918_v11, %v870_v19 }
 0x169   : > { %v920_v15 = vpop.f32.mrf.mxu1 }
 0x16a   : > { %v1074_v16 = vpop.f32.mrf.mxu0  ;;  %v974_v24 = vadd.f32 %v970_v14, %v922_v22 }
 0x16d   : > { %v868_v18 = vpop.f32.mrf.mxu3 }
 0x16f   : > { %v972_v20 = vpop.f32.mrf.mxu2 }
 0x171   : > { %v1123_v21 = vpop.f32.mrf.mxu1 }
 0x175   : > { %v1021_v23 = vpop.f32.mrf.mxu3 }
 0x176   : > { %v1025_v26 = vadd.f32 %v1021_v23, %v974_v24 }
 0x177   : > { %v1174_v25 = vpop.f32.mrf.mxu2 }
 0x178   : > { %v1076_v28 = vadd.f32 %v1072_v12, %v1025_v26 }
 0x179   : > { %v1125_v27 = vpop.f32.mrf.mxu1 }
 0x17a   : > { %v1127_v31 = vadd.f32 %v1123_v21, %v1076_v28 }
 0x17c   : > { %v1178_v32 = vadd.f32 %v1174_v25, %v1127_v31 }
 0x17d   : > { %v1023_v29 = vpop.f32.mrf.mxu3 }
 0x17f   : > { %v1176_v30 = vpop.f32.mrf.mxu2 }
 0x185   : > { %v1225_v33 = vpop.f32.mrf.mxu3 }
 0x186   : > { %v1229_v34 = vadd.f32 %v1225_v33, %v1178_v32 }
 0x188   : > { %v1230_v35 = vmax.f32 %v1229_v34, 0.0 }
 0x18a   : > { %v1231_v36 = vpack.c.bf16 %v1230_v35, %v1230_v35 }
 0x18c   : > { %1812 = vmatmul.msk.bf16.vlgmr.msrb.gmra.mxu0 %vm1249_vm3, %v1231_v36 }
 0x18d   : > { %v1227_v37 = vpop.f32.mrf.mxu3 }
 0x209   : > { %v1262_v39 = vpop.f32.mrf.mxu0 }
 0x20a   : > { %v1263_v40 = vadd.f32 %v1262_v39, %v1236_v38 }
 0x20c   : > { %1267 = vst.msk [vmem:[%s270_s14] sm:$0x1] %vm1266_vm4, %v1263_v40 }
 0x20d   : > { %1966 = shalt.err (!%p1963_p3)
}
 0x20e   : > { %1898 = dma.vmem_to_hbm [thread:$0]  (%p2082_p5), %s1280_s15, 16, %s1282_s16, %s1269_s17  }
 0x211   : > { %v1264_v41 = vpop.f32.mrf.mxu0 }
 0x212 PF: > { %p1904_p4 = scmp.ge.s32.totalorder %s2001_s27, 2  ;;  %s1293_s22 = sand.u32 1, %s1989_s24  }
 0x213   : > { %s1294_s8 = scalar_lea.sflag [#allocation3], %s1293_s22 }
 0x214   : > { %p1901_p7 = pnand %p1904_p4, %p2086_p6 }
 0x216   : > { %p1902_p8 = pneg %p1901_p7 }
 0x218   : > { %1984 = dma.done.wait (%p1902_p8), %s1294_s8, 16  }
 0x219   : > { %1986 = vsyncadd (%p1902_p8), %s1294_s8, 4294967280  ;;  %p17_p9 = scmp.ge.s32.totalorder %s2069_s30, 4   ;;  %s2332_s24 = smov %s1993_s25 }
 0x21a   : > { %s2333_s25 = smov %s1997_s26  ;;  %s2334_s26 = smov %s2080_s10 }
 0x21b   : > { %s2335_s27 = smov %s2069_s30  ;;  %19 = sbr.rel (!%p17_p9) target bundleno = 3 (0x3), region = 93 }
 0x220   :  { %1299 = vsyncpa [#allocation3], 1 }
 0x221   :  { %1301 = vsyncpa [#allocation3 + $0x1], 1 }

</bundles_post_ra>
